<compile_context>
chip_gen: v6e
topology: v6e:2x2x1
jax: 0.10.0
libtpu: 0.0.40
codegen_flags: <defaults>
</compile_context>

<pallas_src>
import functools

import jax
import jax.numpy as jnp
from jax import lax
from jax.experimental import pallas as pl
from jax.experimental.pallas import tpu as pltpu

EPS = 1e-5        # nn.BatchNorm2d default
_LANE = 128


def _round_up(x, m):
    return (x + m - 1) // m * m


@functools.lru_cache(maxsize=None)
def _vmem_budget():
    """Scoped-VMEM budget derived from the chip: ~half of physical VMEM."""
    try:
        cap = int(pltpu.get_tpu_info().vmem_capacity_bytes)
    except Exception:
        cap = 64 * 1024 * 1024
    # 128 MiB (v5e/v6e) -> 64 MiB budget; 64 MiB (v7x per-TC) -> 32 MiB budget.
    return max(32 * 1024 * 1024, min(cap // 2, 96 * 1024 * 1024))


def _m_tiling(m, k_pad, c_pad, vmem_limit):
    """Pick (m_pad, tile_m): biggest tile that fits the VMEM budget, but keep
    >= 2 M tiles whenever m allows so v7x's two TensorCores both get work."""
    # Per-row bytes: double-buffered bf16 x tile + bf16 y tile + f32 temporaries
    # (dot result + squared copy) used by the stats epilogue.
    per_row = 4 * k_pad + 12 * c_pad + 32
    fixed = 4 * k_pad * c_pad + (256 << 10)     # resident (2-buf) bf16 weight + slack
    budget = max(int(vmem_limit * 0.85) - fixed, vmem_limit // 4)
    t_cap = max(256, min(2048, (budget // per_row) // 256 * 256))
    if m >= 32:
        t_half = _round_up((m + 1) // 2, 16)    # >= 2 tiles, bf16 sublane grain
    else:
        t_half = _round_up(max(m, 1), 16)
    t = min(t_cap, t_half)
    return _round_up(m, t), t


# ---------------------------------------------------------------------------
# Pallas kernels
# ---------------------------------------------------------------------------
def _matmul_stats_kernel(x_ref, w_ref, y_ref, stats_ref):
    """Untiled-K bf16 matmul (f32 MXU accumulation) + per-M-tile BN partials.

    x: (tile_m, k_pad) bf16      w: (k_pad, c_pad) bf16 (constant index -> resident)
    y: (tile_m, c_pad) bf16      stats: (1, 2, c_pad) f32  [row 0: colsum, row 1: colsumsq]
    Stats are taken from the f32 dot result before the bf16 cast.
    """
    y = jnp.dot(x_ref[...], w_ref[...], preferred_element_type=jnp.float32)
    y_ref[...] = y.astype(y_ref.dtype)
    stats_ref[0, 0:1, :] = jnp.sum(y, axis=0, keepdims=True)
    stats_ref[0, 1:2, :] = jnp.sum(y * y, axis=0, keepdims=True)


def _bn_add_relu_kernel(y_ref, xres_ref, scale_ref, shift_ref, o_ref):
    """Identity shortcut: relu(bn2(conv2) + x)."""
    o_ref[...] = jnp.maximum(
        y_ref[...].astype(jnp.float32) * scale_ref[...] + shift_ref[...]
        + xres_ref[...].astype(jnp.float32), 0.0)


def _bn2_add_relu_kernel(y2_ref, ys_ref, s2_ref, t2_ref, ss_ref, ts_ref, o_ref):
    """Projection shortcut: relu(bn2(conv2) + bn_s(conv1x1))."""
    r = y2_ref[...].astype(jnp.float32) * s2_ref[...] + t2_ref[...]
    s = ys_ref[...].astype(jnp.float32) * ss_ref[...] + ts_ref[...]
    o_ref[...] = jnp.maximum(r + s, 0.0)


# ---------------------------------------------------------------------------
# pallas_call wrappers
# ---------------------------------------------------------------------------
def _conv_stats(xp, wm, tile_m, vmem_limit):
    """im2col matmul: y(bf16) and per-M-tile (sum, sumsq) BN partials."""
    m_pad, k_pad = xp.shape
    c_pad = wm.shape[1]
    num_m = m_pad // tile_m
    return pl.pallas_call(
        _matmul_stats_kernel,
        out_shape=(jax.ShapeDtypeStruct((m_pad, c_pad), jnp.bfloat16),
                   jax.ShapeDtypeStruct((num_m, 2, c_pad), jnp.float32)),
        grid_spec=pltpu.PrefetchScalarGridSpec(
            num_scalar_prefetch=0,
            grid=(num_m,),
            in_specs=[pl.BlockSpec((tile_m, k_pad), lambda i: (i, 0)),
                      pl.BlockSpec((k_pad, c_pad), lambda i: (0, 0))],
            out_specs=(pl.BlockSpec((tile_m, c_pad), lambda i: (i, 0)),
                       pl.BlockSpec((1, 2, c_pad), lambda i: (i, 0, 0)))),
        compiler_params=pltpu.CompilerParams(
            dimension_semantics=("parallel",),
            vmem_limit_bytes=vmem_limit),
    )(xp, wm)


def _rowwise_call(kernel, row_args, vec_args, out_dtype, tile_m, vmem_limit):
    """Row-tiled fused elementwise pass (BN apply + residual add + ReLU)."""
    m_pad, c_pad = row_args[0].shape
    num_m = m_pad // tile_m
    row_spec = pl.BlockSpec((tile_m, c_pad), lambda i: (i, 0))
    vec_spec = pl.BlockSpec((1, c_pad), lambda i: (0, 0))
    return pl.pallas_call(
        kernel,
        out_shape=jax.ShapeDtypeStruct((m_pad, c_pad), out_dtype),
        grid_spec=pltpu.PrefetchScalarGridSpec(
            num_scalar_prefetch=0,
            grid=(num_m,),
            in_specs=[row_spec] * len(row_args) + [vec_spec] * len(vec_args),
            out_specs=row_spec),
        compiler_params=pltpu.CompilerParams(
            dimension_semantics=("parallel",),
            vmem_limit_bytes=vmem_limit),
    )(*row_args, *vec_args)


def _bn_scale_shift(stats, m_true, g, b):
    """Fold global batch stats into a single multiply-add: y*scale + shift.

    Padded rows/cols of y are exactly zero (zero-padded inputs & weights) so
    they contribute nothing to the sums; divide by the true row count."""
    tot = jnp.sum(stats, axis=0)                 # (2, c_pad)
    mean = tot[0:1] / m_true
    # E[x^2]-E[x]^2 in f32; fine here, see shifted two-pass note for real nets.
    var = jnp.maximum(tot[1:2] / m_true - mean * mean, 0.0)
    scale = g * lax.rsqrt(var + EPS)
    shift = b - mean * scale
    return scale, shift


# ---------------------------------------------------------------------------
# Plain-JAX glue: im2col, weight prep, layout
# ---------------------------------------------------------------------------
def _im2col(x_nhwc, ksize, stride, pad):
    N, H, W, C = x_nhwc.shape
    xp = jnp.pad(x_nhwc, ((0, 0), (pad, pad), (pad, pad), (0, 0)))
    Ho = (H + 2 * pad - ksize) // stride + 1
    Wo = (W + 2 * pad - ksize) // stride + 1
    cols = []
    for kh in range(ksize):
        for kw in range(ksize):
            cols.append(xp[:, kh:kh + (Ho - 1) * stride + 1:stride,
                              kw:kw + (Wo - 1) * stride + 1:stride, :])
    patches = jnp.concatenate(cols, axis=-1)  # (N, Ho, Wo, k*k*C), input dtype
    return patches.reshape(N * Ho * Wo, ksize * ksize * C), Ho, Wo


def prepare_params(params, in_channels, stride):
    """One-time weight reshape/pad to MXU layout (hoisted out of forward)."""
    cout = params["w1"].shape[0]
    c_pad = _round_up(cout, _LANE)
    proj = (stride != 1) or (in_channels != cout)

    def wmat(w_oihw):
        o, i, kh, kw = w_oihw.shape
        k = kh * kw * i
        k_pad = _round_up(k, _LANE)   # K untiled: <= 9*512 for BasicBlock
        wm = jnp.transpose(w_oihw, (2, 3, 1, 0)).reshape(k, o)
        wm = jnp.pad(wm, ((0, k_pad - k), (0, c_pad - o)))
        return wm.astype(jnp.bfloat16), k_pad

    def vec(v, fill):
        return jnp.pad(v.astype(jnp.float32), (0, c_pad - v.shape[0]),
                       constant_values=fill).reshape(1, c_pad)

    w1m, k1_pad = wmat(params["w1"])
    w2m, k2_pad = wmat(params["w2"])
    prep = dict(stride=stride, cout=cout, c_pad=c_pad, proj=proj,
                w1m=w1m, k1_pad=k1_pad, w2m=w2m, k2_pad=k2_pad,
                g1=vec(params["g1"], 1.0), b1=vec(params["b1"], 0.0),
                g2=vec(params["g2"], 1.0), b2=vec(params["b2"], 0.0))
    if proj:
        wsm, ks_pad = wmat(params["ws"])
        prep.update(wsm=wsm, ks_pad=ks_pad,
                    gs=vec(params["gs"], 1.0), bs=vec(params["bs"], 0.0))
    return prep


def basic_block_forward(x_nchw, prep):
    """Forward of the PyTorch BasicBlock. Input/output are NCHW float32."""
    stride = prep["stride"]
    cout, c_pad = prep["cout"], prep["c_pad"]
    n, cin, h, w = x_nchw.shape
    # TODO(synk): in a full ResNet keep activations NHWC between blocks and
    # drop these entry/exit transposes (a full extra HBM pass each).
    x = jnp.transpose(x_nchw, (0, 2, 3, 1)).astype(jnp.float32)
    x_bf = x.astype(jnp.bfloat16)   # bf16 BEFORE im2col: halves the 9x patch blob

    x1, ho, wo = _im2col(x_bf, 3, stride, 1)       # (M, 9*Cin) bf16
    m = n * ho * wo
    k_max = max(prep["k1_pad"], prep["k2_pad"], prep.get("ks_pad", 0))
    vmem = _vmem_budget()
    m_pad, tile_m = _m_tiling(m, k_max, c_pad, vmem)

    def pad2(a, rows, cols):
        return jnp.pad(a, ((0, rows - a.shape[0]), (0, cols - a.shape[1])))

    # conv1 (bf16 matmul, f32 acc) + BN1 batch-stat partials
    y1, st1 = _conv_stats(pad2(x1, m_pad, prep["k1_pad"]), prep["w1m"],
                          tile_m, vmem)
    sc1, sh1 = _bn_scale_shift(st1, m, prep["g1"], prep["b1"])

    # BN1-apply + ReLU fused (by XLA) into conv2's im2col producer: z1 is a
    # fusion temporary, never a standalone Pallas round trip through HBM.
    z1 = jnp.maximum(y1[:m, :cout].astype(jnp.float32) * sc1[:, :cout]
                     + sh1[:, :cout], 0.0).astype(jnp.bfloat16)
    x2, _, _ = _im2col(z1.reshape(n, ho, wo, cout), 3, 1, 1)   # (M, 9*Cout) bf16
    y2, st2 = _conv_stats(pad2(x2, m_pad, prep["k2_pad"]), prep["w2m"],
                          tile_m, vmem)
    sc2, sh2 = _bn_scale_shift(st2, m, prep["g2"], prep["b2"])

    if prep["proj"]:
        xs = x_bf[:, ::stride, ::stride, :].reshape(m, cin)
        ys, sts = _conv_stats(pad2(xs, m_pad, prep["ks_pad"]), prep["wsm"],
                              tile_m, vmem)
        scs, shs = _bn_scale_shift(sts, m, prep["gs"], prep["bs"])
        out = _rowwise_call(_bn2_add_relu_kernel, [y2, ys],
                            [sc2, sh2, scs, shs], jnp.float32, tile_m, vmem)
    else:
        # Residual kept f32 to match torch's identity shortcut bit-for-bit;
        # a bf16 view would halve this stream's bytes at ~1e-3 extra abs error.
        xres = pad2(x.reshape(m, cin), m_pad, c_pad)
        out = _rowwise_call(_bn_add_relu_kernel, [y2, xres],
                            [sc2, sh2], jnp.float32, tile_m, vmem)

    out = out[:m, :cout].reshape(n, ho, wo, cout)
    return jnp.transpose(out, (0, 3, 1, 2))        # back to NCHW


# ---------------------------------------------------------------------------
# Pure-JAX reference (numerical sanity check; bf16 conv inputs like the kernel)
# ---------------------------------------------------------------------------
def _bn_ref(y_nhwc, g, b):
    mu = jnp.mean(y_nhwc, axis=(0, 1, 2), keepdims=True)
    vv = jnp.mean(jnp.square(y_nhwc - mu), axis=(0, 1, 2), keepdims=True)
    return (y_nhwc - mu) * lax.rsqrt(vv + EPS) * g + b


def reference_forward(x_nchw, params, stride=1):
    x = jnp.transpose(x_nchw, (0, 2, 3, 1)).astype(jnp.float32)

    def conv(xx, w_oihw, s, pad):
        w = jnp.transpose(w_oihw, (2, 3, 1, 0)).astype(jnp.bfloat16)
        return lax.conv_general_dilated(
            xx.astype(jnp.bfloat16), w, (s, s), [(pad, pad), (pad, pad)],
            dimension_numbers=("NHWC", "HWIO", "NHWC"),
            preferred_element_type=jnp.float32)

    r = conv(x, params["w1"], stride, 1)
    r = jnp.maximum(_bn_ref(r, params["g1"], params["b1"]), 0.0)
    r = conv(r, params["w2"], 1, 1)
    r = _bn_ref(r, params["g2"], params["b2"])
    cin, cout = x.shape[-1], params["w1"].shape[0]
    if stride != 1 or cin != cout:
        s = conv(x, params["ws"], stride, 0)
        s = _bn_ref(s, params["gs"], params["bs"])
    else:
        s = x
    out = jnp.maximum(r + s, 0.0)
    return jnp.transpose(out, (0, 3, 1, 2))


if __name__ == "__main__":
    key = jax.random.PRNGKey(0)

    def make_params(k, cin, cout, proj):
        ks = jax.random.split(k, 9)
        p = dict(
            w1=0.2 * jax.random.normal(ks[1], (cout, cin, 3, 3), jnp.float32),
            g1=1.0 + 0.1 * jax.random.normal(ks[2], (cout,), jnp.float32),
            b1=0.1 * jax.random.normal(ks[3], (cout,), jnp.float32),
            w2=0.2 * jax.random.normal(ks[4], (cout, cout, 3, 3), jnp.float32),
            g2=1.0 + 0.1 * jax.random.normal(ks[5], (cout,), jnp.float32),
            b2=0.1 * jax.random.normal(ks[6], (cout,), jnp.float32),
        )
        if proj:
            p.update(
                ws=0.2 * jax.random.normal(ks[7], (cout, cin, 1, 1), jnp.float32),
                gs=1.0 + 0.1 * jax.random.normal(ks[8], (cout,), jnp.float32),
                bs=jnp.zeros((cout,), jnp.float32))
        return p

    # bf16 patches / bf16 conv outputs (perf review) => expect ~1e-2-level abs
    # deviations from the f32-stat reference; 4e-2 still catches structural bugs.
    TOL = 4e-2
    k1, k2, k3, k4 = jax.random.split(key, 4)

    # Case 1: stride-2 projection-shortcut block.
    N, Cin, H, W, Cout, stride = 2, 4, 16, 16, 8, 2
    x = jax.random.normal(k1, (N, Cin, H, W), jnp.float32)
    params = make_params(k2, Cin, Cout, True)
    prep = prepare_params(params, Cin, stride)
    fwd = jax.jit(functools.partial(basic_block_forward, prep=prep))
    out = jax.block_until_ready(fwd(x))
    assert out.shape == (N, Cout, H // stride, W // stride), out.shape
    ref = reference_forward(x, params, stride=stride)
    err = float(jnp.max(jnp.abs(out - ref)))
    assert err < TOL, f"projection path mismatch vs reference: {err}"

    # Case 2: stride-1 identity-shortcut block.
    Cin2 = Cout2 = 8
    x2 = jax.random.normal(k3, (2, Cin2, 16, 16), jnp.float32)
    params2 = make_params(k4, Cin2, Cout2, False)
    prep2 = prepare_params(params2, Cin2, 1)
    fwd2 = jax.jit(functools.partial(basic_block_forward, prep=prep2))
    out2 = jax.block_until_ready(fwd2(x2))
    assert out2.shape == (2, Cout2, 16, 16), out2.shape
    ref2 = reference_forward(x2, params2, stride=1)
    err2 = float(jnp.max(jnp.abs(out2 - ref2)))
    assert err2 < TOL, f"identity path mismatch vs reference: {err2}"

    print("KERNEL_OK")
</pallas_src>

<mosaic_0001>
module attributes {stable_mosaic.version = 11 : i64} {
  func.func @_matmul_stats_kernel(%arg0: i32, %arg1: memref<64x128xbf16, #tpu.memory_space<vmem>>, %arg2: memref<128x128xbf16, #tpu.memory_space<vmem>>, %arg3: memref<64x128xbf16, #tpu.memory_space<vmem>>, %arg4: memref<1x2x128xf32, #tpu.memory_space<vmem>>) attributes {dimension_semantics = [#tpu.dimension_semantics<parallel>], iteration_bounds = array<i64: 2>, scalar_prefetch = 0 : i64, scratch_operands = 0 : i64, tpu.core_type = #tpu.core_type<tc>, window_params = [{transform_indices = @transform_0, window_bounds = array<i64: 64, 128>}, {pipeline_mode = #tpu.pipeline_mode<synchronous>, transform_indices = @transform_1, window_bounds = array<i64: 128, 128>}, {transform_indices = @transform_2, window_bounds = array<i64: 64, 128>}, {transform_indices = @transform_3, window_bounds = array<i64: 1, 2, 128>}]} {
    %c0 = arith.constant 0 : index
    %c0_0 = arith.constant 0 : index
    %0 = vector.load %arg1[%c0, %c0_0] : memref<64x128xbf16, #tpu.memory_space<vmem>>, vector<64x128xbf16>
    %c0_1 = arith.constant 0 : index
    %c0_2 = arith.constant 0 : index
    %1 = vector.load %arg2[%c0_1, %c0_2] : memref<128x128xbf16, #tpu.memory_space<vmem>>, vector<128x128xbf16>
    %cst = arith.constant dense<0.000000e+00> : vector<64x128xf32>
    %2 = tpu.matmul %0, %1, %cst {dimension_numbers = #tpu.dot_dimension_numbers<[1], [0], [0], [1], [0, 0, 1, 1], [], []>} : vector<64x128xbf16>, vector<128x128xbf16>, vector<64x128xf32> -> vector<64x128xf32>
    %3 = arith.truncf %2 : vector<64x128xf32> to vector<64x128xbf16>
    %c0_3 = arith.constant 0 : index
    %c0_4 = arith.constant 0 : index
    %4 = vector.load %arg3[%c0_3, %c0_4] : memref<64x128xbf16, #tpu.memory_space<vmem>>, vector<64x128xbf16>
    tpu.vector_store %arg3[%c0_3, %c0_4], %3 {strides = array<i32>} : memref<64x128xbf16, #tpu.memory_space<vmem>>, vector<64x128xbf16>,
    %cst_5 = arith.constant dense<0.000000e+00> : vector<128xf32>
    %5 = vector.multi_reduction <add>, %2, %cst_5 [0] : vector<64x128xf32> to vector<128xf32>
    %6 = vector.shape_cast %5 : vector<128xf32> to vector<1x128xf32>
    %c0_6 = arith.constant 0 : index
    %c0_7 = arith.constant 0 : index
    %c0_8 = arith.constant 0 : index
    %7 = vector.load %arg4[%c0_6, %c0_7, %c0_8] : memref<1x2x128xf32, #tpu.memory_space<vmem>>, vector<1x1x128xf32>
    %8 = vector.shape_cast %7 : vector<1x1x128xf32> to vector<1x128xf32>
    %9 = vector.shape_cast %6 : vector<1x128xf32> to vector<1x1x128xf32>
    tpu.vector_store %arg4[%c0_6, %c0_7, %c0_8], %9 {strides = array<i32>} : memref<1x2x128xf32, #tpu.memory_space<vmem>>, vector<1x1x128xf32>,
    %10 = arith.mulf %2, %2 : vector<64x128xf32>
    %cst_9 = arith.constant dense<0.000000e+00> : vector<128xf32>
    %11 = vector.multi_reduction <add>, %10, %cst_9 [0] : vector<64x128xf32> to vector<128xf32>
    %12 = vector.shape_cast %11 : vector<128xf32> to vector<1x128xf32>
    %c0_10 = arith.constant 0 : index
    %c1 = arith.constant 1 : index
    %c0_11 = arith.constant 0 : index
    %13 = vector.load %arg4[%c0_10, %c1, %c0_11] : memref<1x2x128xf32, #tpu.memory_space<vmem>>, vector<1x1x128xf32>
    %14 = vector.shape_cast %13 : vector<1x1x128xf32> to vector<1x128xf32>
    %15 = vector.shape_cast %12 : vector<1x128xf32> to vector<1x1x128xf32>
    tpu.vector_store %arg4[%c0_10, %c1, %c0_11], %15 {strides = array<i32>} : memref<1x2x128xf32, #tpu.memory_space<vmem>>, vector<1x1x128xf32>,
    return
  }
  func.func @transform_0(%arg0: i32) -> (i32, i32) {
    %c0_i32 = arith.constant 0 : i32
    %c0_i32_0 = arith.constant 0 : i32
    return %arg0, %c0_i32 : i32, i32
  }
  func.func @transform_1(%arg0: i32) -> (i32, i32) {
    %c0_i32 = arith.constant 0 : i32
    %c0_i32_0 = arith.constant 0 : i32
    %c0_i32_1 = arith.constant 0 : i32
    return %c0_i32, %c0_i32_0 : i32, i32
  }
  func.func @transform_2(%arg0: i32) -> (i32, i32) {
    %c0_i32 = arith.constant 0 : i32
    %c0_i32_0 = arith.constant 0 : i32
    return %arg0, %c0_i32 : i32, i32
  }
  func.func @transform_3(%arg0: i32) -> (i32, i32, i32) {
    %c0_i32 = arith.constant 0 : i32
    %c0_i32_0 = arith.constant 0 : i32
    %c0_i32_1 = arith.constant 0 : i32
    return %arg0, %c0_i32, %c0_i32_0 : i32, i32, i32
  }
}

module attributes {stable_mosaic.version = 11 : i64} {
  func.func @_bn2_add_relu_kernel(%arg0: i32, %arg1: memref<64x128xbf16, #tpu.memory_space<vmem>>, %arg2: memref<64x128xbf16, #tpu.memory_space<vmem>>, %arg3: memref<1x128xf32, #tpu.memory_space<vmem>>, %arg4: memref<1x128xf32, #tpu.memory_space<vmem>>, %arg5: memref<1x128xf32, #tpu.memory_space<vmem>>, %arg6: memref<1x128xf32, #tpu.memory_space<vmem>>, %arg7: memref<64x128xf32, #tpu.memory_space<vmem>>) attributes {dimension_semantics = [#tpu.dimension_semantics<parallel>], iteration_bounds = array<i64: 2>, scalar_prefetch = 0 : i64, scratch_operands = 0 : i64, tpu.core_type = #tpu.core_type<tc>, window_params = [{transform_indices = @transform_0, window_bounds = array<i64: 64, 128>}, {transform_indices = @transform_1, window_bounds = array<i64: 64, 128>}, {pipeline_mode = #tpu.pipeline_mode<synchronous>, transform_indices = @transform_2, window_bounds = array<i64: 1, 128>}, {pipeline_mode = #tpu.pipeline_mode<synchronous>, transform_indices = @transform_3, window_bounds = array<i64: 1, 128>}, {pipeline_mode = #tpu.pipeline_mode<synchronous>, transform_indices = @transform_4, window_bounds = array<i64: 1, 128>}, {pipeline_mode = #tpu.pipeline_mode<synchronous>, transform_indices = @transform_5, window_bounds = array<i64: 1, 128>}, {transform_indices = @transform_6, window_bounds = array<i64: 64, 128>}]} {
    %c0 = arith.constant 0 : index
    %c0_0 = arith.constant 0 : index
    %0 = vector.load %arg1[%c0, %c0_0] : memref<64x128xbf16, #tpu.memory_space<vmem>>, vector<64x128xbf16>
    %1 = arith.extf %0 : vector<64x128xbf16> to vector<64x128xf32>
    %c0_1 = arith.constant 0 : index
    %c0_2 = arith.constant 0 : index
    %2 = vector.load %arg3[%c0_1, %c0_2] : memref<1x128xf32, #tpu.memory_space<vmem>>, vector<1x128xf32>
    %3 = vector.broadcast %2 : vector<1x128xf32> to vector<64x128xf32>
    %4 = arith.mulf %1, %3 : vector<64x128xf32>
    %c0_3 = arith.constant 0 : index
    %c0_4 = arith.constant 0 : index
    %5 = vector.load %arg4[%c0_3, %c0_4] : memref<1x128xf32, #tpu.memory_space<vmem>>, vector<1x128xf32>
    %6 = vector.broadcast %5 : vector<1x128xf32> to vector<64x128xf32>
    %7 = arith.addf %4, %6 : vector<64x128xf32>
    %c0_5 = arith.constant 0 : index
    %c0_6 = arith.constant 0 : index
    %8 = vector.load %arg2[%c0_5, %c0_6] : memref<64x128xbf16, #tpu.memory_space<vmem>>, vector<64x128xbf16>
    %9 = arith.extf %8 : vector<64x128xbf16> to vector<64x128xf32>
    %c0_7 = arith.constant 0 : index
    %c0_8 = arith.constant 0 : index
    %10 = vector.load %arg5[%c0_7, %c0_8] : memref<1x128xf32, #tpu.memory_space<vmem>>, vector<1x128xf32>
    %11 = vector.broadcast %10 : vector<1x128xf32> to vector<64x128xf32>
    %12 = arith.mulf %9, %11 : vector<64x128xf32>
    %c0_9 = arith.constant 0 : index
    %c0_10 = arith.constant 0 : index
    %13 = vector.load %arg6[%c0_9, %c0_10] : memref<1x128xf32, #tpu.memory_space<vmem>>, vector<1x128xf32>
    %14 = vector.broadcast %13 : vector<1x128xf32> to vector<64x128xf32>
    %15 = arith.addf %12, %14 : vector<64x128xf32>
    %16 = arith.addf %7, %15 : vector<64x128xf32>
    %cst = arith.constant 0.000000e+00 : f32
    %17 = vector.broadcast %cst : f32 to vector<64x128xf32>
    %18 = arith.maximumf %16, %17 : vector<64x128xf32>
    %c0_11 = arith.constant 0 : index
    %c0_12 = arith.constant 0 : index
    %19 = vector.load %arg7[%c0_11, %c0_12] : memref<64x128xf32, #tpu.memory_space<vmem>>, vector<64x128xf32>
    tpu.vector_store %arg7[%c0_11, %c0_12], %18 {strides = array<i32>} : memref<64x128xf32, #tpu.memory_space<vmem>>, vector<64x128xf32>,
    return
  }
  func.func @transform_0(%arg0: i32) -> (i32, i32) {
    %c0_i32 = arith.constant 0 : i32
    %c0_i32_0 = arith.constant 0 : i32
    return %arg0, %c0_i32 : i32, i32
  }
  func.func @transform_1(%arg0: i32) -> (i32, i32) {
    %c0_i32 = arith.constant 0 : i32
    %c0_i32_0 = arith.constant 0 : i32
    return %arg0, %c0_i32 : i32, i32
  }
  func.func @transform_2(%arg0: i32) -> (i32, i32) {
    %c0_i32 = arith.constant 0 : i32
    %c0_i32_0 = arith.constant 0 : i32
    %c0_i32_1 = arith.constant 0 : i32
    return %c0_i32, %c0_i32_0 : i32, i32
  }
  func.func @transform_3(%arg0: i32) -> (i32, i32) {
    %c0_i32 = arith.constant 0 : i32
    %c0_i32_0 = arith.constant 0 : i32
    %c0_i32_1 = arith.constant 0 : i32
    return %c0_i32, %c0_i32_0 : i32, i32
  }
  func.func @transform_4(%arg0: i32) -> (i32, i32) {
    %c0_i32 = arith.constant 0 : i32
    %c0_i32_0 = arith.constant 0 : i32
    %c0_i32_1 = arith.constant 0 : i32
    return %c0_i32, %c0_i32_0 : i32, i32
  }
  func.func @transform_5(%arg0: i32) -> (i32, i32) {
    %c0_i32 = arith.constant 0 : i32
    %c0_i32_0 = arith.constant 0 : i32
    %c0_i32_1 = arith.constant 0 : i32
    return %c0_i32, %c0_i32_0 : i32, i32
  }
  func.func @transform_6(%arg0: i32) -> (i32, i32) {
    %c0_i32 = arith.constant 0 : i32
    %c0_i32_0 = arith.constant 0 : i32
    return %arg0, %c0_i32 : i32, i32
  }
}

</mosaic_0001>

<bundles_post_ra>
// kernel: basic_block_forward.4
= control target key start
LH: loop header
LB: loop body
LE: loop exit
PB: predicated region body
PF: predicated region fallthrough
CT: control target
= control target key end

     0   :  { %s673_s12 = smov 0   ;;  %s735_s0 = inlined_call_operand.vmem [shape: bf16[128,128], index: 0, kind: input, shape index: {}]   ;;  %s736_s1 = inlined_call_operand.vmem [shape: bf16[128,128], index: 1, kind: input, shape index: {}]   ;;  %s737_s2 = inlined_call_operand.vmem [shape: bf16[128,128], index: 2, kind: output, shape index: {0}]   ;;  %s738_s3 = inlined_call_operand.vmem [shape: f32[2,2,128], index: 3, kind: output, shape index: {1}]  }
   0x1 LB: > { %s679_s13 = sadd.s32 4294967295, %s651_s12   ;;  %p514_p0 = scmp.ge.s32.totalorder %s651_s12, 1  ;;  %s651_s12 = sphi %s673_s12, %s14_s12  }
   0x2   : > { %p141_p1 = scmp.lt.s32.totalorder %s651_s12, 3 }
   0x4   : > { %p142_p2 = pnand %p514_p0, %p141_p1 }
   0x5   : > { %s515_s16 = sshll.u32 (!%p142_p2), %s679_s13, 3  ;;  %p181_p4 = scmp.lt.s32.totalorder (!%p142_p2), %s679_s13, 1 }
   0x6   : > { %145 = sbr.rel (%p142_p2) target bundleno = 272 (0x110), region = 28  ;;  %p170_p3 = scmp.lt.s32.totalorder (!%p142_p2), %s515_s16, 15 }
   0xb   : > { %v633_v0 = vld [vmem:[%s736_s1 + $0x38] sm:$0xff]   ;;  %v634_v1 = vld [vmem:[%s736_s1 + $0x30] sm:$0xff]   ;;  %s740_s16 = smov (!%p170_p3, %s515_s16), 15  ;;  %v635_v2 = vld [vmem:[%s736_s1 + $0x28] sm:$0xff]   ;;  %s742_s13 = smov (!%p181_p4, %s679_s13), 1 }
   0xc   : > { %585 = vmatprep.subr.bf16.mxu0 %v633_v0  ;;  %609 = vmatprep.subr.bf16.mxu1 %v633_v0  ;;  %s516_s21 = sshll.u32 %s740_s16, 2  ;;  %v636_v3 = vld [vmem:[%s736_s1 + $0x20] sm:$0xff]   ;;  %v637_v6 = vld [vmem:[%s736_s1 + $0x18] sm:$0xff]   ;;  %v638_v7 = vld [vmem:[%s736_s1 + $0x10] sm:$0xff]   ;;  %s519_s11 = sshll.u32 %s742_s13, 1 }
   0xd   : > { %586 = vmatpush3.bf16.msra.mxu0 %v633_v0  ;;  %617 = vmatpush3.bf16.msra.mxu1 %v633_v0  ;;  %s701_s24 = scalar_lea.vmem %s735_s0, %s516_s21  ;;  %v639_v8 = vld [vmem:[%s736_s1 + $0x8] sm:$0xff]   ;;  %v640_v9 = vld [vmem:[%s736_s1] sm:$0xff]   ;;  %s179_s10 = scalar_lea.vmem %s737_s2, %s516_s21 }
   0xe   : > { %587 = vmatprep.subr.bf16.mxu0 %v634_v1  ;;  %610 = vmatprep.subr.bf16.mxu1 %v634_v1  ;;  %v641_v4 = vld [vmem:[%s701_s24] sm:$0xff]   ;;  %v643_v5 = vld [vmem:[%s701_s24 + $0x10] sm:$0xff]   ;;  %v642_v10 = vld [vmem:[%s701_s24 + $0x8] sm:$0xff]   ;;  %s184_s16 = scalar_lea.vmem %s738_s3, %s519_s11 }
   0xf   : > { %601 = vmatprep.mubr.bf16.mxu0 %v641_v4  ;;  %605 = vmatprep.mubr.bf16.mxu1 %v643_v5  ;;  %v644_v11 = vld [vmem:[%s701_s24 + $0x18] sm:$0xff]  }
  0x11   : > { %588 = vmatpush3.bf16.msra.mxu0 %v634_v1  ;;  %618 = vmatpush3.bf16.msra.mxu1 %v634_v1 }
  0x12   : > { %589 = vmatprep.subr.bf16.mxu0 %v635_v2  ;;  %611 = vmatprep.subr.bf16.mxu1 %v635_v2 }
  0x15   : > { %590 = vmatpush3.bf16.msra.mxu0 %v635_v2  ;;  %619 = vmatpush3.bf16.msra.mxu1 %v635_v2 }
  0x16   : > { %591 = vmatprep.subr.bf16.mxu0 %v636_v3  ;;  %612 = vmatprep.subr.bf16.mxu1 %v636_v3 }
  0x19   : > { %592 = vmatpush3.bf16.msra.mxu0 %v636_v3  ;;  %620 = vmatpush3.bf16.msra.mxu1 %v636_v3 }
  0x1a   : > { %593 = vmatprep.subr.bf16.mxu0 %v637_v6  ;;  %613 = vmatprep.subr.bf16.mxu1 %v637_v6 }
  0x1d   : > { %594 = vmatpush3.bf16.msra.mxu0 %v637_v6  ;;  %621 = vmatpush3.bf16.msra.mxu1 %v637_v6 }
  0x1e   : > { %595 = vmatprep.subr.bf16.mxu0 %v638_v7  ;;  %614 = vmatprep.subr.bf16.mxu1 %v638_v7 }
  0x21   : > { %596 = vmatpush3.bf16.msra.mxu0 %v638_v7  ;;  %622 = vmatpush3.bf16.msra.mxu1 %v638_v7 }
  0x22   : > { %597 = vmatprep.subr.bf16.mxu0 %v639_v8  ;;  %615 = vmatprep.subr.bf16.mxu1 %v639_v8 }
  0x25   : > { %598 = vmatpush3.bf16.msra.mxu0 %v639_v8  ;;  %623 = vmatpush3.bf16.msra.mxu1 %v639_v8 }
  0x26   : > { %599 = vmatprep.subr.bf16.mxu0 %v640_v9  ;;  %616 = vmatprep.subr.bf16.mxu1 %v640_v9 }
  0x29   : > { %600 = vmatpush3.bf16.msra.mxu0 %v640_v9  ;;  %624 = vmatpush3.bf16.msra.mxu1 %v640_v9 }
  0x2c   : > { %602 = vmatmul.mubr.bf16.vlgmr.msra.gmra.mxu0 %v642_v10  ;;  %606 = vmatmul.mubr.bf16.vlgmr.msra.gmra.mxu1 %v644_v11 }
  0xec   : > { %v603_v12 = vpop.f32.mrf.mxu0  ;;  %v607_v13 = vpop.f32.mrf.mxu1 }
  0xed   : > { %v403_v27 = vmul.f32 %v603_v12, %v603_v12  ;;  %v407_v39 = vmul.f32 %v607_v13, %v607_v13 }
  0xee   : > { %v316_v14 = vpop.f32.mrf.mxu0  ;;  %v332_v15 = vpop.f32.mrf.mxu1 }
  0xef   : > { %v401_v20 = vmul.f32 %v316_v14, %v316_v14  ;;  %v405_v33 = vmul.f32 %v332_v15, %v332_v15 }
  0xf0   : > { %v604_v16 = vpop.f32.mrf.mxu0  ;;  %v608_v17 = vpop.f32.mrf.mxu1 }
  0xf1   : > { %v558_v18 = vpack.c.bf16 %v604_v16, %v603_v12  ;;  %v568_v19 = vpack.c.bf16 %v608_v17, %v607_v13  ;;  %v404_v30 = vmul.f32 %v604_v16, %v604_v16  ;;  %v408_v42 = vmul.f32 %v608_v17, %v608_v17 }
  0xf2   : > { %v319_v21 = vpop.f32.mrf.mxu0  ;;  %v335_v22 = vpop.f32.mrf.mxu1 }
  0xf3   : > { %570 = vst [vmem:[%s179_s10 + $0x8] sm:$0xff] %v558_v18   ;;  %v553_v23 = vpack.c.bf16 %v319_v21, %v316_v14  ;;  %v387_v24 = vadd.f32 %v319_v21, %v316_v14  ;;  %v402_v25 = vmul.f32 %v319_v21, %v319_v21  ;;  %572 = vst [vmem:[%s179_s10 + $0x18] sm:$0xff] %v568_v19  }
  0xf4   : > { %v563_v26 = vpack.c.bf16 %v335_v22, %v332_v15  ;;  %v406_v37 = vmul.f32 %v335_v22, %v335_v22 }
  0xf5   : > { %554 = vst [vmem:[%s179_s10] sm:$0xff] %v553_v23   ;;  %v388_v28 = vadd.f32 %v603_v12, %v387_v24  ;;  %v409_v29 = vadd.f32 %v402_v25, %v401_v20 }
  0xf6   : > { %571 = vst [vmem:[%s179_s10 + $0x10] sm:$0xff] %v563_v26  }
  0xf7   : > { %v410_v31 = vadd.f32 %v409_v29, %v403_v27  ;;  %v389_v32 = vadd.f32 %v604_v16, %v388_v28 }
  0xf9   : > { %v390_v34 = vadd.f32 %v389_v32, %v332_v15  ;;  %v411_v35 = vadd.f32 %v410_v31, %v404_v30 }
  0xfb   : > { %v391_v36 = vadd.f32 %v390_v34, %v335_v22  ;;  %v412_v38 = vadd.f32 %v411_v35, %v405_v33 }
  0xfd   : > { %v392_v40 = vadd.f32 %v607_v13, %v391_v36  ;;  %v413_v41 = vadd.f32 %v412_v38, %v406_v37 }
  0xff   : > { %v393_v43 = vadd.f32 %v608_v17, %v392_v40  ;;  %v414_v44 = vadd.f32 %v413_v41, %v407_v39 }
 0x101   : > { %v394_v45 = vrot.slane %v393_v43, 4  ;;  %v415_v46 = vadd.f32 %v414_v44, %v408_v42 }
 0x103   : > { %v395_v47 = vadd.f32 %v394_v45, %v393_v43  ;;  %v416_v48 = vrot.slane %v415_v46, 4 }
 0x105   : > { %v396_v49 = vrot.slane %v395_v47, 2  ;;  %v417_v50 = vadd.f32 %v416_v48, %v415_v46 }
 0x107   : > { %v397_v51 = vadd.f32 %v396_v49, %v395_v47  ;;  %v418_v52 = vrot.slane %v417_v50, 2 }
 0x109   : > { %v398_v53 = vrot.slane %v397_v51, 1  ;;  %v419_v54 = vadd.f32 %v418_v52, %v417_v50 }
 0x10b   : > { %v399_v55 = vadd.f32 %v398_v53, %v397_v51  ;;  %v420_v56 = vrot.slane %v419_v54, 1 }
 0x10d   : > { %400 = vst [vmem:[%s184_s16] sm:$0x1] %v399_v55  ;;  %v421_v57 = vadd.f32 %v420_v56, %v419_v54 }
 0x10f   : > { %422 = vst [vmem:[%s184_s16 + $0x1] sm:$0x1] %v421_v57 }
 0x110 PF: > { %s14_s12 = sadd.s32 1, %s651_s12  }
 0x111   : > { %p11_p5 = scmp.ge.s32.totalorder %s14_s12, 4  }
 0x113   :  { %13 = sbr.rel (!%p11_p5) target bundleno = 1 (0x1), region = 70 }

// kernel: basic_block_forward.7
= control target key start
LH: loop header
LB: loop body
LE: loop exit
PB: predicated region body
PF: predicated region fallthrough
CT: control target
= control target key end

     0   :  { %s567_s21 = smov 0   ;;  %s665_s0 = inlined_call_operand.vmem [shape: bf16[128,128], index: 0, kind: input, shape index: {}]   ;;  %s666_s1 = inlined_call_operand.vmem [shape: bf16[128,128], index: 1, kind: input, shape index: {}]   ;;  %s667_s2 = inlined_call_operand.vmem [shape: f32[1,128], index: 2, kind: input, shape index: {}]   ;;  %s668_s3 = inlined_call_operand.vmem [shape: f32[1,128], index: 3, kind: input, shape index: {}]   ;;  %s669_s4 = inlined_call_operand.vmem [shape: f32[1,128], index: 4, kind: input, shape index: {}]   ;;  %s670_s5 = inlined_call_operand.vmem [shape: f32[1,128], index: 5, kind: input, shape index: {}]   ;;  %s671_s6 = inlined_call_operand.vmem [shape: f32[128,128], index: 6, kind: output, shape index: {}]  }
   0x1 LB: > { %s461_s22 = sadd.s32 4294967295, %s530_s21   ;;  %p465_p0 = scmp.ge.s32.totalorder %s530_s21, 1  ;;  %s530_s21 = sphi %s567_s21, %s16_s21  }
   0x2   : > { %p224_p1 = scmp.lt.s32.totalorder %s530_s21, 3 }
   0x4   : > { %p225_p2 = pnand %p465_p0, %p224_p1 }
   0x5   : > { %s466_s23 = sshll.u32 (!%p225_p2), %s461_s22, 3 }
   0x6   : > { %228 = sbr.rel (%p225_p2) target bundleno = 37 (0x25), region = 44  ;;  %p260_p3 = scmp.lt.s32.totalorder (!%p225_p2), %s466_s23, 15 }
   0xb   : > { %s673_s23 = smov (!%p260_p3, %s466_s23), 15  ;;  %v591_v0 = vld [vmem:[%s667_s2] ss:$0 sm:$0xff] }
   0xc   : > { %s467_s24 = sshll.u32 %s673_s23, 2  ;;  %v596_v1 = vld [vmem:[%s669_s4] ss:$0 sm:$0xff]  ;;  %s471_s15 = sshll.u32 %s673_s23, 3 }
   0xd   : > { %s581_s27 = scalar_lea.vmem %s665_s0, %s467_s24  ;;  %s586_s30 = scalar_lea.vmem %s666_s1, %s467_s24  ;;  %v605_v10 = vld [vmem:[%s668_s3] ss:$0 sm:$0xff] }
   0xe   : > { %v479_v2 = vld [vmem:[%s581_s27] sm:$0xff]   ;;  %v510_v4 = vld [vmem:[%s581_s27 + $0x8] sm:$0xff]   ;;  %v511_v24 = vld [vmem:[%s581_s27 + $0x10] sm:$0xff]   ;;  %s634_s18 = scalar_lea.vmem %s671_s6, %s471_s15 }
   0xf   : > { %v495_v3 = vld [vmem:[%s586_s30] sm:$0xff]   ;;  %v480_v5 = vunpack.c.l.bf16 %v479_v2  ;;  %v481_v7 = vunpack.c.h.bf16 %v479_v2  ;;  %v513_v9 = vld [vmem:[%s586_s30 + $0x8] sm:$0xff]   ;;  %v484_v12 = vunpack.c.l.bf16 %v510_v4  ;;  %v485_v14 = vunpack.c.h.bf16 %v510_v4  ;;  %v514_v25 = vld [vmem:[%s586_s30 + $0x10] sm:$0xff]  }
  0x10   : > { %v496_v6 = vunpack.c.l.bf16 %v495_v3  ;;  %v497_v8 = vunpack.c.h.bf16 %v495_v3  ;;  %v610_v11 = vld [vmem:[%s670_s5] ss:$0 sm:$0xff]  ;;  %v500_v13 = vunpack.c.l.bf16 %v513_v9  ;;  %v501_v15 = vunpack.c.h.bf16 %v513_v9  ;;  %v512_v42 = vld [vmem:[%s581_s27 + $0x18] sm:$0xff]  }
  0x11   : > { %v300_v16 = vmul.f32 %v480_v5, %v591_v0  ;;  %v301_v18 = vmul.f32 %v481_v7, %v591_v0  ;;  %v302_v20 = vmul.f32 %v484_v12, %v591_v0  ;;  %v303_v22 = vmul.f32 %v485_v14, %v591_v0  ;;  %v515_v43 = vld [vmem:[%s586_s30 + $0x18] sm:$0xff]  }
  0x12   : > { %v346_v17 = vmul.f32 %v496_v6, %v596_v1  ;;  %v347_v19 = vmul.f32 %v497_v8, %v596_v1  ;;  %v348_v21 = vmul.f32 %v500_v13, %v596_v1  ;;  %v349_v23 = vmul.f32 %v501_v15, %v596_v1 }
  0x13   : > { %v315_v26 = vadd.f32 %v605_v10, %v300_v16  ;;  %v316_v28 = vadd.f32 %v605_v10, %v301_v18  ;;  %v317_v30 = vadd.f32 %v605_v10, %v302_v20  ;;  %v318_v32 = vadd.f32 %v605_v10, %v303_v22 }
  0x14   : > { %v361_v27 = vadd.f32 %v610_v11, %v346_v17  ;;  %v362_v29 = vadd.f32 %v610_v11, %v347_v19  ;;  %v363_v31 = vadd.f32 %v610_v11, %v348_v21  ;;  %v364_v33 = vadd.f32 %v610_v11, %v349_v23 }
  0x15   : > { %v488_v36 = vunpack.c.l.bf16 %v511_v24  ;;  %v504_v37 = vunpack.c.l.bf16 %v514_v25  ;;  %v489_v40 = vunpack.c.h.bf16 %v511_v24  ;;  %v505_v41 = vunpack.c.h.bf16 %v514_v25 }
  0x16   : > { %v369_v34 = vadd.f32 %v361_v27, %v315_v26  ;;  %v370_v35 = vadd.f32 %v362_v29, %v316_v28  ;;  %v371_v38 = vadd.f32 %v363_v31, %v317_v30  ;;  %v372_v39 = vadd.f32 %v364_v33, %v318_v32 }
  0x17   : > { %v304_v46 = vmul.f32 %v488_v36, %v591_v0  ;;  %v350_v47 = vmul.f32 %v504_v37, %v596_v1  ;;  %v305_v50 = vmul.f32 %v489_v40, %v591_v0  ;;  %v351_v51 = vmul.f32 %v505_v41, %v596_v1 }
  0x18   : > { %v377_v44 = vmax.f32 %v369_v34, 0.0  ;;  %v378_v45 = vmax.f32 %v370_v35, 0.0  ;;  %v379_v48 = vmax.f32 %v371_v38, 0.0  ;;  %v380_v49 = vmax.f32 %v372_v39, 0.0 }
  0x19   : > { %v319_v52 = vadd.f32 %v605_v10, %v304_v46  ;;  %v365_v53 = vadd.f32 %v610_v11, %v350_v47  ;;  %v492_v54 = vunpack.c.l.bf16 %v512_v42  ;;  %v508_v55 = vunpack.c.l.bf16 %v515_v43 }
  0x1a   : > { %385 = vst [vmem:[%s634_s18] sm:$0xff] %v377_v44  ;;  %386 = vst [vmem:[%s634_s18 + $0x8] sm:$0xff] %v378_v45  ;;  %v320_v56 = vadd.f32 %v605_v10, %v305_v50  ;;  %v366_v57 = vadd.f32 %v610_v11, %v351_v51  ;;  %v493_v58 = vunpack.c.h.bf16 %v512_v42  ;;  %v509_v59 = vunpack.c.h.bf16 %v515_v43 }
  0x1b   : > { %387 = vst [vmem:[%s634_s18 + $0x10] sm:$0xff] %v379_v48  ;;  %388 = vst [vmem:[%s634_s18 + $0x18] sm:$0xff] %v380_v49  ;;  %v373_v60 = vadd.f32 %v365_v53, %v319_v52  ;;  %v306_v61 = vmul.f32 %v492_v54, %v591_v0  ;;  %v352_v62 = vmul.f32 %v508_v55, %v596_v1 }
  0x1c   : > { %v374_v63 = vadd.f32 %v366_v57, %v320_v56  ;;  %v307_v2 = vmul.f32 %v493_v58, %v591_v0  ;;  %v353_v3 = vmul.f32 %v509_v59, %v596_v1 }
  0x1d   : > { %v381_v4 = vmax.f32 %v373_v60, 0.0  ;;  %v321_v5 = vadd.f32 %v605_v10, %v306_v61  ;;  %v367_v6 = vadd.f32 %v610_v11, %v352_v62 }
  0x1e   : > { %v382_v7 = vmax.f32 %v374_v63, 0.0  ;;  %v322_v8 = vadd.f32 %v605_v10, %v307_v2  ;;  %v368_v9 = vadd.f32 %v610_v11, %v353_v3 }
  0x1f   : > { %389 = vst [vmem:[%s634_s18 + $0x20] sm:$0xff] %v381_v4  ;;  %v375_v12 = vadd.f32 %v367_v6, %v321_v5 }
  0x20   : > { %390 = vst [vmem:[%s634_s18 + $0x28] sm:$0xff] %v382_v7  ;;  %v376_v13 = vadd.f32 %v368_v9, %v322_v8 }
  0x21   : > { %v383_v14 = vmax.f32 %v375_v12, 0.0 }
  0x22   : > { %v384_v15 = vmax.f32 %v376_v13, 0.0 }
  0x23   : > { %391 = vst [vmem:[%s634_s18 + $0x30] sm:$0xff] %v383_v14 }
  0x24   : > { %392 = vst [vmem:[%s634_s18 + $0x38] sm:$0xff] %v384_v15 }
  0x25 PF: > { %s16_s21 = sadd.s32 1, %s530_s21  }
  0x26   : > { %p13_p4 = scmp.ge.s32.totalorder %s16_s21, 4  }
  0x28   :  { %15 = sbr.rel (!%p13_p4) target bundleno = 1 (0x1), region = 77 }

</bundles_post_ra>
